<compile_context>
chip_gen: v7x
topology: tpu7x:2x2x1
jax: 0.10.0
libtpu: 0.0.40
codegen_flags: <defaults>
</compile_context>

<pallas_src>
import math

import jax
import jax.numpy as jnp
from jax import lax
from jax.experimental import pallas as pl
from jax.experimental.pallas import tpu as pltpu

# ---- configuration (small, deterministic) ----
EMBED_DIM = 32
DENSE_DIM = 64
NUM_HEADS = 4
SEQ_LEN = 8
BATCH = 1                      # the module's final broadcast only works for B == 1
HEAD_DIM = EMBED_DIM // NUM_HEADS
LN_EPS = 1e-5
BN_EPS = 1e-5
BN_INV_STD = 1.0 / math.sqrt(1.0 + BN_EPS)   # eval-mode BN with running_mean=0, running_var=1

# ---- single packed parameter slab layout: (N_ROWS, 128) f32 ----
LANES = 128
R_WQKV = 0                      # rows 0:E      cols 0:3E = [Wq^T*scale | Wk^T | Wv^T], cols 3E:4E = Wo^T
R_W1 = EMBED_DIM                # rows E:2E     cols 0:D  = W1^T
R_W2 = R_W1 + EMBED_DIM         # rows 2E:2E+D  cols 0:E  = W2^T with eval-mode BN folded in
R_VEC = R_W2 + DENSE_DIM        # 8 vector rows (see V_* below)
V_BQKV, V_BO, V_B2, V_LN1W, V_LN1B, V_LN2W, V_LN2B, V_B1 = range(8)
N_ROWS = R_VEC + 8              # 136 rows -> ~68 KB slab


def _layer_norm(x, w, b, eps=LN_EPS):
    mu = jnp.mean(x, axis=-1, keepdims=True)
    xc = x - mu
    var = jnp.mean(xc * xc, axis=-1, keepdims=True)
    return xc * lax.rsqrt(var + eps) * w + b


def encoder_block_kernel(
    x_ref,        # (S*B, E)      token rows (seq-first, B == 1)
    p_ref,        # (N_ROWS, 128) packed parameter slab (see layout above)
    out_ref,      # (S, S*B*E)    lane-dense output; wrapper reshapes to (S, S*B, E)
):
    E, D, H, Dh, S = EMBED_DIM, DENSE_DIM, NUM_HEADS, HEAD_DIM, SEQ_LEN
    f32 = jnp.float32
    cdims = (((1,), (1,)), ((), ()))            # contract last dims: 'sd,td->st' (no .T needed)

    x = x_ref[...]                              # (S, E)   (S*B == S since B == 1)

    # --- unpack parameters from the single slab ---
    wqkv = p_ref[R_WQKV:R_WQKV + E, 0:3 * E]            # (E, 3E)  q block pre-scaled by 1/sqrt(Dh)
    woT = p_ref[R_WQKV:R_WQKV + E, 3 * E:4 * E]         # (E, E)   out_proj_w.T
    w1 = p_ref[R_W1:R_W1 + E, 0:D]                      # (E, D)
    w2 = p_ref[R_W2:R_W2 + D, 0:E]                      # (D, E)   BN scale folded
    bqkv = p_ref[R_VEC + V_BQKV:R_VEC + V_BQKV + 1, 0:3 * E]   # (1, 3E)  q bias pre-scaled
    bo = p_ref[R_VEC + V_BO:R_VEC + V_BO + 1, 0:E]
    b2f = p_ref[R_VEC + V_B2:R_VEC + V_B2 + 1, 0:E]
    ln1w = p_ref[R_VEC + V_LN1W:R_VEC + V_LN1W + 1, 0:E]
    ln1b = p_ref[R_VEC + V_LN1B:R_VEC + V_LN1B + 1, 0:E]
    ln2w = p_ref[R_VEC + V_LN2W:R_VEC + V_LN2W + 1, 0:E]
    ln2b = p_ref[R_VEC + V_LN2B:R_VEC + V_LN2B + 1, 0:E]
    b1 = p_ref[R_VEC + V_B1:R_VEC + V_B1 + 1, 0:D]

    # ---- multi-head self-attention (nn.MultiheadAttention, eval mode) ----
    # single fused QKV projection: one MXU push instead of 12 per-head dots
    qkv = jnp.dot(x, wqkv, preferred_element_type=f32) + bqkv          # (S, 3E)

    # per-head logits (tiny dots), stacked along sublanes so the softmax chain runs ONCE
    logit_blocks = []
    for h in range(H):                                                  # static unrolled
        qh = qkv[:, h * Dh:(h + 1) * Dh]                                # (S, Dh)
        kh = qkv[:, E + h * Dh:E + (h + 1) * Dh]                        # (S, Dh)
        logit_blocks.append(lax.dot_general(qh, kh, cdims, preferred_element_type=f32))
    logits = jnp.concatenate(logit_blocks, axis=0)                      # (H*S, S)
    logits = logits - jnp.max(logits, axis=-1, keepdims=True)
    p = jnp.exp(logits)
    p = p * pl.reciprocal(jnp.sum(p, axis=-1, keepdims=True), approx=True)

    # per-head context, concatenated along lanes -> ONE out-proj matmul (no serial accumulate)
    o_blocks = []
    for h in range(H):
        ph = p[h * S:(h + 1) * S, :]                                    # (S, S)
        vh = qkv[:, 2 * E + h * Dh:2 * E + (h + 1) * Dh]                # (S, Dh)
        o_blocks.append(jnp.dot(ph, vh, preferred_element_type=f32))    # (S, Dh)
    attn_cat = jnp.concatenate(o_blocks, axis=1)                        # (S, E)
    attn_out = jnp.dot(attn_cat, woT, preferred_element_type=f32) + bo  # (S, E)

    # ---- residual + LayerNorm1 (self.dropout is identity in eval mode) ----
    h1 = _layer_norm(x + attn_out, ln1w, ln1b)                          # (S, E)

    # ---- fc: Linear -> ReLU -> (Dropout) -> BatchNorm1d(eval, folded) -> Linear -> (Dropout) ----
    f = jnp.maximum(jnp.dot(h1, w1, preferred_element_type=f32) + b1, 0.0)   # (S, D)
    fc_out = jnp.dot(f, w2, preferred_element_type=f32) + b2f                # (S, E)

    # ---- x = fc_out.view(S, B, E); x = layer_norm2(x + fc_out)  -> (S, S*B, E) for B == 1 ----
    # y[i, j, :] = fc_out[i] + fc_out[j].  LN2 restructured via a Gram matmul:
    #   mean(y[i,j]) = mu[i] + mu[j],  var(y[i,j]) = v[i] + v[j] + 2*G[i,j],  G = a @ a^T / E
    mu = jnp.mean(fc_out, axis=-1, keepdims=True)                       # (S, 1)
    a = fc_out - mu                                                     # (S, E) centered
    v = jnp.mean(a * a, axis=-1, keepdims=True)                         # (S, 1)
    gram = lax.dot_general(a, a, cdims, preferred_element_type=f32) * (1.0 / E)   # (S, S)
    half = v + 2.0 * gram                                               # half[i,j] = v[i] + 2G[i,j]

    # build the lane-dense (S, S*E) output: block j occupies lanes [j*E, (j+1)*E)
    blocks = []
    for j in range(S):                                                  # static unrolled
        rstd_j = lax.rsqrt(half[:, j:j + 1] + v[j:j + 1, :] + LN_EPS)   # (S, 1)
        c_j = a + a[j:j + 1, :]                                         # (S, E) centered y[:, j, :]
        blocks.append(c_j * rstd_j * ln2w + ln2b)
    out_ref[...] = jnp.concatenate(blocks, axis=1)                      # (S, S*E) lane-dense store


def pack_params(params):
    """One-time parameter prep: fold scales / eval-mode BN, pack everything into ONE slab."""
    E, D, Dh = EMBED_DIM, DENSE_DIM, HEAD_DIM
    scale = 1.0 / math.sqrt(Dh)
    f32 = jnp.float32

    # attention: [Wq^T * scale | Wk^T | Wv^T] and out_proj_w^T, with the qkv bias pre-scaled
    wq_t = params["in_proj_w"][:E].T * scale
    wk_t = params["in_proj_w"][E:2 * E].T
    wv_t = params["in_proj_w"][2 * E:].T
    wqkv_t = jnp.concatenate([wq_t, wk_t, wv_t], axis=1)               # (E, 3E)
    bqkv = jnp.concatenate([params["in_proj_b"][:E] * scale,
                            params["in_proj_b"][E:2 * E],
                            params["in_proj_b"][2 * E:]])               # (3E,)

    # FFN: fold eval-mode BatchNorm1d (running stats 0/1) into the second Linear
    bn_scale = params["bn_w"] * BN_INV_STD
    w2f = bn_scale[:, None] * params["w2"].T                            # (D, E)
    b2f = params["bn_b"] @ params["w2"].T + params["b2"]                # (E,)

    P = jnp.zeros((N_ROWS, LANES), f32)
    P = P.at[R_WQKV:R_WQKV + E, 0:3 * E].set(wqkv_t.astype(f32))
    P = P.at[R_WQKV:R_WQKV + E, 3 * E:4 * E].set(params["out_proj_w"].T.astype(f32))
    P = P.at[R_W1:R_W1 + E, 0:D].set(params["w1"].T.astype(f32))
    P = P.at[R_W2:R_W2 + D, 0:E].set(w2f.astype(f32))
    P = P.at[R_VEC + V_BQKV, 0:3 * E].set(bqkv.astype(f32))
    P = P.at[R_VEC + V_BO, 0:E].set(params["out_proj_b"].astype(f32))
    P = P.at[R_VEC + V_B2, 0:E].set(b2f.astype(f32))
    P = P.at[R_VEC + V_LN1W, 0:E].set(params["ln1_w"].astype(f32))
    P = P.at[R_VEC + V_LN1B, 0:E].set(params["ln1_b"].astype(f32))
    P = P.at[R_VEC + V_LN2W, 0:E].set(params["ln2_w"].astype(f32))
    P = P.at[R_VEC + V_LN2B, 0:E].set(params["ln2_b"].astype(f32))
    P = P.at[R_VEC + V_B1, 0:D].set(params["b1"].astype(f32))
    return P


def transformer_encoder_block(x_bse, p_slab):
    B, S, E = x_bse.shape
    assert (B, S, E) == (BATCH, SEQ_LEN, EMBED_DIM) and B == 1

    # glue: the module's x.permute(1, 0, 2) and .view(-1, E) (pure layout)
    x_tokens = jnp.transpose(x_bse, (1, 0, 2)).reshape(S * B, E)

    out_dense = pl.pallas_call(
        encoder_block_kernel,
        out_shape=jax.ShapeDtypeStruct((S, S * B * E), jnp.float32),
        in_specs=[pl.BlockSpec(memory_space=pltpu.MemorySpace.VMEM)] * 2,
        out_specs=pl.BlockSpec(memory_space=pltpu.MemorySpace.VMEM),
    )(x_tokens, p_slab)

    # lane-dense (S, S*B*E) -> module's (S, S*B, E) output (row-major, pure reshape)
    return out_dense.reshape(S, S * B, E)


# ---- pure-JAX reference (mirrors the PyTorch forward, eval mode; uses the unpacked params) ----
def reference_forward(x_bse, params):
    E, H, Dh = EMBED_DIM, NUM_HEADS, HEAD_DIM
    x = jnp.transpose(x_bse, (1, 0, 2))              # (S, B, E)
    S, B, _ = x.shape
    xf = x.reshape(S * B, E)
    qkv = xf @ params["in_proj_w"].T + params["in_proj_b"]
    q, k, v = qkv[:, :E], qkv[:, E:2 * E], qkv[:, 2 * E:]

    def heads(t):
        return jnp.transpose(t.reshape(S, B * H, Dh), (1, 0, 2))

    qh, kh, vh = heads(q) * (Dh ** -0.5), heads(k), heads(v)
    p = jax.nn.softmax(jnp.einsum("hsd,htd->hst", qh, kh), axis=-1)
    a = jnp.transpose(jnp.einsum("hst,htd->hsd", p, vh), (1, 0, 2)).reshape(S * B, E)
    attn_out = a @ params["out_proj_w"].T + params["out_proj_b"]

    h1 = _layer_norm(x + attn_out.reshape(S, B, E), params["ln1_w"], params["ln1_b"])
    hf = h1.reshape(S * B, E)
    f = jnp.maximum(hf @ params["w1"].T + params["b1"], 0.0)
    f = f * (params["bn_w"] * BN_INV_STD) + params["bn_b"]
    fc_out = f @ params["w2"].T + params["b2"]
    x3 = fc_out.reshape(S, B, E)
    return _layer_norm(x3 + fc_out, params["ln2_w"], params["ln2_b"])


def init_params(key):
    E, D = EMBED_DIM, DENSE_DIM
    ks = jax.random.split(key, 14)

    def uniform(k, shape, fan_in):
        b = 1.0 / math.sqrt(fan_in)
        return jax.random.uniform(k, shape, jnp.float32, minval=-b, maxval=b)

    # LN / BN affine params randomized (instead of 1/0) to exercise the folding paths.
    return dict(
        in_proj_w=uniform(ks[0], (3 * E, E), E),
        in_proj_b=uniform(ks[1], (3 * E,), E),
        out_proj_w=uniform(ks[2], (E, E), E),
        out_proj_b=uniform(ks[3], (E,), E),
        ln1_w=1.0 + 0.1 * jax.random.normal(ks[4], (E,), jnp.float32),
        ln1_b=0.1 * jax.random.normal(ks[5], (E,), jnp.float32),
        w1=uniform(ks[6], (D, E), E),
        b1=uniform(ks[7], (D,), E),
        bn_w=1.0 + 0.1 * jax.random.normal(ks[8], (D,), jnp.float32),
        bn_b=0.1 * jax.random.normal(ks[9], (D,), jnp.float32),
        w2=uniform(ks[10], (E, D), D),
        b2=uniform(ks[11], (E,), D),
        ln2_w=1.0 + 0.1 * jax.random.normal(ks[12], (E,), jnp.float32),
        ln2_b=0.1 * jax.random.normal(ks[13], (E,), jnp.float32),
    )


if __name__ == "__main__":
    key = jax.random.PRNGKey(0)
    pkey, xkey = jax.random.split(key)
    params = init_params(pkey)
    p_slab = pack_params(params)               # one-time parameter prep (folds scales / BN)
    x = jax.random.normal(xkey, (BATCH, SEQ_LEN, EMBED_DIM), jnp.float32)

    out = transformer_encoder_block(x, p_slab)
    out = jax.block_until_ready(out)

    ref = reference_forward(x, params)
    assert out.shape == (SEQ_LEN, SEQ_LEN * BATCH, EMBED_DIM), out.shape
    max_err = float(jnp.max(jnp.abs(out - ref)))
    assert jnp.allclose(out, ref, atol=2e-3, rtol=2e-3), f"max_err={max_err}"
    print("KERNEL_OK")
</pallas_src>

<mosaic_0001>
module attributes {stable_mosaic.version = 11 : i64} {
  func.func @encoder_block_kernel(%arg0: memref<8x32xf32, #tpu.memory_space<vmem>>, %arg1: memref<136x128xf32, #tpu.memory_space<vmem>>, %arg2: memref<8x256xf32, #tpu.memory_space<vmem>>) attributes {dimension_semantics = [], scalar_prefetch = 0 : i64, scratch_operands = 0 : i64, tpu.core_type = #tpu.core_type<tc>} {
    %c0 = arith.constant 0 : index
    %c0_0 = arith.constant 0 : index
    %0 = vector.load %arg0[%c0, %c0_0] : memref<8x32xf32, #tpu.memory_space<vmem>>, vector<8x32xf32>
    %c0_1 = arith.constant 0 : index
    %c0_2 = arith.constant 0 : index
    %1 = vector.load %arg1[%c0_1, %c0_2] : memref<136x128xf32, #tpu.memory_space<vmem>>, vector<32x96xf32>
    %c0_3 = arith.constant 0 : index
    %c96 = arith.constant 96 : index
    %2 = vector.load %arg1[%c0_3, %c96] : memref<136x128xf32, #tpu.memory_space<vmem>>, vector<32x32xf32>
    %c32 = arith.constant 32 : index
    %c0_4 = arith.constant 0 : index
    %3 = vector.load %arg1[%c32, %c0_4] : memref<136x128xf32, #tpu.memory_space<vmem>>, vector<32x64xf32>
    %c64 = arith.constant 64 : index
    %c0_5 = arith.constant 0 : index
    %4 = vector.load %arg1[%c64, %c0_5] : memref<136x128xf32, #tpu.memory_space<vmem>>, vector<64x32xf32>
    %c128 = arith.constant 128 : index
    %c0_6 = arith.constant 0 : index
    %5 = vector.load %arg1[%c128, %c0_6] : memref<136x128xf32, #tpu.memory_space<vmem>>, vector<1x96xf32>
    %c129 = arith.constant 129 : index
    %c0_7 = arith.constant 0 : index
    %6 = vector.load %arg1[%c129, %c0_7] : memref<136x128xf32, #tpu.memory_space<vmem>>, vector<1x32xf32>
    %c130 = arith.constant 130 : index
    %c0_8 = arith.constant 0 : index
    %7 = vector.load %arg1[%c130, %c0_8] : memref<136x128xf32, #tpu.memory_space<vmem>>, vector<1x32xf32>
    %c131 = arith.constant 131 : index
    %c0_9 = arith.constant 0 : index
    %8 = vector.load %arg1[%c131, %c0_9] : memref<136x128xf32, #tpu.memory_space<vmem>>, vector<1x32xf32>
    %c132 = arith.constant 132 : index
    %c0_10 = arith.constant 0 : index
    %9 = vector.load %arg1[%c132, %c0_10] : memref<136x128xf32, #tpu.memory_space<vmem>>, vector<1x32xf32>
    %c133 = arith.constant 133 : index
    %c0_11 = arith.constant 0 : index
    %10 = vector.load %arg1[%c133, %c0_11] : memref<136x128xf32, #tpu.memory_space<vmem>>, vector<1x32xf32>
    %c134 = arith.constant 134 : index
    %c0_12 = arith.constant 0 : index
    %11 = vector.load %arg1[%c134, %c0_12] : memref<136x128xf32, #tpu.memory_space<vmem>>, vector<1x32xf32>
    %c135 = arith.constant 135 : index
    %c0_13 = arith.constant 0 : index
    %12 = vector.load %arg1[%c135, %c0_13] : memref<136x128xf32, #tpu.memory_space<vmem>>, vector<1x64xf32>
    %cst = arith.constant dense<0.000000e+00> : vector<8x96xf32>
    %13 = tpu.matmul %0, %1, %cst {dimension_numbers = #tpu.dot_dimension_numbers<[1], [0], [0], [1], [0, 0, 1, 1], [], []>} : vector<8x32xf32>, vector<32x96xf32>, vector<8x96xf32> -> vector<8x96xf32>
    %14 = vector.broadcast %5 : vector<1x96xf32> to vector<8x96xf32>
    %15 = arith.addf %13, %14 : vector<8x96xf32>
    %16 = vector.extract_strided_slice %15 {offsets = [0, 0], sizes = [8, 8], strides = [1, 1]} : vector<8x96xf32> to vector<8x8xf32>
    %17 = vector.extract_strided_slice %15 {offsets = [0, 32], sizes = [8, 8], strides = [1, 1]} : vector<8x96xf32> to vector<8x8xf32>
    %cst_14 = arith.constant dense<0.000000e+00> : vector<8x8xf32>
    %18 = tpu.matmul %16, %17, %cst_14 {dimension_numbers = #tpu.dot_dimension_numbers<[1], [1], [0], [0], [0, 0, 1, 0], [], []>} : vector<8x8xf32>, vector<8x8xf32>, vector<8x8xf32> -> vector<8x8xf32>
    %19 = vector.extract_strided_slice %15 {offsets = [0, 8], sizes = [8, 8], strides = [1, 1]} : vector<8x96xf32> to vector<8x8xf32>
    %20 = vector.extract_strided_slice %15 {offsets = [0, 40], sizes = [8, 8], strides = [1, 1]} : vector<8x96xf32> to vector<8x8xf32>
    %cst_15 = arith.constant dense<0.000000e+00> : vector<8x8xf32>
    %21 = tpu.matmul %19, %20, %cst_15 {dimension_numbers = #tpu.dot_dimension_numbers<[1], [1], [0], [0], [0, 0, 1, 0], [], []>} : vector<8x8xf32>, vector<8x8xf32>, vector<8x8xf32> -> vector<8x8xf32>
    %22 = vector.extract_strided_slice %15 {offsets = [0, 16], sizes = [8, 8], strides = [1, 1]} : vector<8x96xf32> to vector<8x8xf32>
    %23 = vector.extract_strided_slice %15 {offsets = [0, 48], sizes = [8, 8], strides = [1, 1]} : vector<8x96xf32> to vector<8x8xf32>
    %cst_16 = arith.constant dense<0.000000e+00> : vector<8x8xf32>
    %24 = tpu.matmul %22, %23, %cst_16 {dimension_numbers = #tpu.dot_dimension_numbers<[1], [1], [0], [0], [0, 0, 1, 0], [], []>} : vector<8x8xf32>, vector<8x8xf32>, vector<8x8xf32> -> vector<8x8xf32>
    %25 = vector.extract_strided_slice %15 {offsets = [0, 24], sizes = [8, 8], strides = [1, 1]} : vector<8x96xf32> to vector<8x8xf32>
    %26 = vector.extract_strided_slice %15 {offsets = [0, 56], sizes = [8, 8], strides = [1, 1]} : vector<8x96xf32> to vector<8x8xf32>
    %cst_17 = arith.constant dense<0.000000e+00> : vector<8x8xf32>
    %27 = tpu.matmul %25, %26, %cst_17 {dimension_numbers = #tpu.dot_dimension_numbers<[1], [1], [0], [0], [0, 0, 1, 0], [], []>} : vector<8x8xf32>, vector<8x8xf32>, vector<8x8xf32> -> vector<8x8xf32>
    %28 = tpu.concatenate %18, %21, %24, %27 in 0 : vector<8x8xf32>, vector<8x8xf32>, vector<8x8xf32>, vector<8x8xf32> -> vector<32x8xf32>
    %cst_18 = arith.constant dense<0xFF800000> : vector<32xf32>
    %29 = vector.multi_reduction <maximumf>, %28, %cst_18 [1] : vector<32x8xf32> to vector<32xf32>
    %30 = vector.shape_cast %29 : vector<32xf32> to vector<32x1xf32>
    %31 = vector.broadcast %30 : vector<32x1xf32> to vector<32x8xf32>
    %32 = arith.subf %28, %31 : vector<32x8xf32>
    %33 = math.exp %32 : vector<32x8xf32>
    %cst_19 = arith.constant dense<0.000000e+00> : vector<32xf32>
    %34 = vector.multi_reduction <add>, %33, %cst_19 [1] : vector<32x8xf32> to vector<32xf32>
    %35 = vector.shape_cast %34 : vector<32xf32> to vector<32x1xf32>
    %36 = tpu.reciprocal %35 {approx = true} : vector<32x1xf32> -> vector<32x1xf32>
    %37 = vector.broadcast %36 : vector<32x1xf32> to vector<32x8xf32>
    %38 = arith.mulf %33, %37 : vector<32x8xf32>
    %39 = vector.extract_strided_slice %38 {offsets = [0, 0], sizes = [8, 8], strides = [1, 1]} : vector<32x8xf32> to vector<8x8xf32>
    %40 = vector.extract_strided_slice %15 {offsets = [0, 64], sizes = [8, 8], strides = [1, 1]} : vector<8x96xf32> to vector<8x8xf32>
    %cst_20 = arith.constant dense<0.000000e+00> : vector<8x8xf32>
    %41 = tpu.matmul %39, %40, %cst_20 {dimension_numbers = #tpu.dot_dimension_numbers<[1], [0], [0], [1], [0, 0, 1, 1], [], []>} : vector<8x8xf32>, vector<8x8xf32>, vector<8x8xf32> -> vector<8x8xf32>
    %42 = vector.extract_strided_slice %38 {offsets = [8, 0], sizes = [8, 8], strides = [1, 1]} : vector<32x8xf32> to vector<8x8xf32>
    %43 = vector.extract_strided_slice %15 {offsets = [0, 72], sizes = [8, 8], strides = [1, 1]} : vector<8x96xf32> to vector<8x8xf32>
    %cst_21 = arith.constant dense<0.000000e+00> : vector<8x8xf32>
    %44 = tpu.matmul %42, %43, %cst_21 {dimension_numbers = #tpu.dot_dimension_numbers<[1], [0], [0], [1], [0, 0, 1, 1], [], []>} : vector<8x8xf32>, vector<8x8xf32>, vector<8x8xf32> -> vector<8x8xf32>
    %45 = vector.extract_strided_slice %38 {offsets = [16, 0], sizes = [8, 8], strides = [1, 1]} : vector<32x8xf32> to vector<8x8xf32>
    %46 = vector.extract_strided_slice %15 {offsets = [0, 80], sizes = [8, 8], strides = [1, 1]} : vector<8x96xf32> to vector<8x8xf32>
    %cst_22 = arith.constant dense<0.000000e+00> : vector<8x8xf32>
    %47 = tpu.matmul %45, %46, %cst_22 {dimension_numbers = #tpu.dot_dimension_numbers<[1], [0], [0], [1], [0, 0, 1, 1], [], []>} : vector<8x8xf32>, vector<8x8xf32>, vector<8x8xf32> -> vector<8x8xf32>
    %48 = vector.extract_strided_slice %38 {offsets = [24, 0], sizes = [8, 8], strides = [1, 1]} : vector<32x8xf32> to vector<8x8xf32>
    %49 = vector.extract_strided_slice %15 {offsets = [0, 88], sizes = [8, 8], strides = [1, 1]} : vector<8x96xf32> to vector<8x8xf32>
    %cst_23 = arith.constant dense<0.000000e+00> : vector<8x8xf32>
    %50 = tpu.matmul %48, %49, %cst_23 {dimension_numbers = #tpu.dot_dimension_numbers<[1], [0], [0], [1], [0, 0, 1, 1], [], []>} : vector<8x8xf32>, vector<8x8xf32>, vector<8x8xf32> -> vector<8x8xf32>
    %51 = tpu.concatenate %41, %44, %47, %50 in 1 : vector<8x8xf32>, vector<8x8xf32>, vector<8x8xf32>, vector<8x8xf32> -> vector<8x32xf32>
    %cst_24 = arith.constant dense<0.000000e+00> : vector<8x32xf32>
    %52 = tpu.matmul %51, %2, %cst_24 {dimension_numbers = #tpu.dot_dimension_numbers<[1], [0], [0], [1], [0, 0, 1, 1], [], []>} : vector<8x32xf32>, vector<32x32xf32>, vector<8x32xf32> -> vector<8x32xf32>
    %53 = vector.broadcast %6 : vector<1x32xf32> to vector<8x32xf32>
    %54 = arith.addf %52, %53 : vector<8x32xf32>
    %55 = arith.addf %0, %54 : vector<8x32xf32>
    %cst_25 = arith.constant dense<0.000000e+00> : vector<8xf32>
    %56 = vector.multi_reduction <add>, %55, %cst_25 [1] : vector<8x32xf32> to vector<8xf32>
    %57 = vector.shape_cast %56 : vector<8xf32> to vector<8x1xf32>
    %cst_26 = arith.constant 3.200000e+01 : f32
    %58 = vector.broadcast %cst_26 : f32 to vector<8x1xf32>
    %59 = arith.divf %57, %58 : vector<8x1xf32>
    %60 = vector.broadcast %59 : vector<8x1xf32> to vector<8x32xf32>
    %61 = arith.subf %55, %60 : vector<8x32xf32>
    %62 = arith.mulf %61, %61 : vector<8x32xf32>
    %cst_27 = arith.constant dense<0.000000e+00> : vector<8xf32>
    %63 = vector.multi_reduction <add>, %62, %cst_27 [1] : vector<8x32xf32> to vector<8xf32>
    %64 = vector.shape_cast %63 : vector<8xf32> to vector<8x1xf32>
    %cst_28 = arith.constant 3.200000e+01 : f32
    %65 = vector.broadcast %cst_28 : f32 to vector<8x1xf32>
    %66 = arith.divf %64, %65 : vector<8x1xf32>
    %cst_29 = arith.constant 9.99999974E-6 : f32
    %67 = vector.broadcast %cst_29 : f32 to vector<8x1xf32>
    %68 = arith.addf %66, %67 : vector<8x1xf32>
    %69 = math.rsqrt %68 : vector<8x1xf32>
    %70 = vector.broadcast %69 : vector<8x1xf32> to vector<8x32xf32>
    %71 = arith.mulf %61, %70 : vector<8x32xf32>
    %72 = vector.broadcast %8 : vector<1x32xf32> to vector<8x32xf32>
    %73 = arith.mulf %71, %72 : vector<8x32xf32>
    %74 = vector.broadcast %9 : vector<1x32xf32> to vector<8x32xf32>
    %75 = arith.addf %73, %74 : vector<8x32xf32>
    %cst_30 = arith.constant dense<0.000000e+00> : vector<8x64xf32>
    %76 = tpu.matmul %75, %3, %cst_30 {dimension_numbers = #tpu.dot_dimension_numbers<[1], [0], [0], [1], [0, 0, 1, 1], [], []>} : vector<8x32xf32>, vector<32x64xf32>, vector<8x64xf32> -> vector<8x64xf32>
    %77 = vector.broadcast %12 : vector<1x64xf32> to vector<8x64xf32>
    %78 = arith.addf %76, %77 : vector<8x64xf32>
    %cst_31 = arith.constant 0.000000e+00 : f32
    %79 = vector.broadcast %cst_31 : f32 to vector<8x64xf32>
    %80 = arith.maximumf %78, %79 : vector<8x64xf32>
    %cst_32 = arith.constant dense<0.000000e+00> : vector<8x32xf32>
    %81 = tpu.matmul %80, %4, %cst_32 {dimension_numbers = #tpu.dot_dimension_numbers<[1], [0], [0], [1], [0, 0, 1, 1], [], []>} : vector<8x64xf32>, vector<64x32xf32>, vector<8x32xf32> -> vector<8x32xf32>
    %82 = vector.broadcast %7 : vector<1x32xf32> to vector<8x32xf32>
    %83 = arith.addf %81, %82 : vector<8x32xf32>
    %cst_33 = arith.constant dense<0.000000e+00> : vector<8xf32>
    %84 = vector.multi_reduction <add>, %83, %cst_33 [1] : vector<8x32xf32> to vector<8xf32>
    %85 = vector.shape_cast %84 : vector<8xf32> to vector<8x1xf32>
    %cst_34 = arith.constant 3.200000e+01 : f32
    %86 = vector.broadcast %cst_34 : f32 to vector<8x1xf32>
    %87 = arith.divf %85, %86 : vector<8x1xf32>
    %88 = vector.broadcast %87 : vector<8x1xf32> to vector<8x32xf32>
    %89 = arith.subf %83, %88 : vector<8x32xf32>
    %90 = arith.mulf %89, %89 : vector<8x32xf32>
    %cst_35 = arith.constant dense<0.000000e+00> : vector<8xf32>
    %91 = vector.multi_reduction <add>, %90, %cst_35 [1] : vector<8x32xf32> to vector<8xf32>
    %92 = vector.shape_cast %91 : vector<8xf32> to vector<8x1xf32>
    %cst_36 = arith.constant 3.200000e+01 : f32
    %93 = vector.broadcast %cst_36 : f32 to vector<8x1xf32>
    %94 = arith.divf %92, %93 : vector<8x1xf32>
    %cst_37 = arith.constant dense<0.000000e+00> : vector<8x8xf32>
    %95 = tpu.matmul %89, %89, %cst_37 {dimension_numbers = #tpu.dot_dimension_numbers<[1], [1], [0], [0], [0, 0, 1, 0], [], []>} : vector<8x32xf32>, vector<8x32xf32>, vector<8x8xf32> -> vector<8x8xf32>
    %cst_38 = arith.constant 3.125000e-02 : f32
    %96 = vector.broadcast %cst_38 : f32 to vector<8x8xf32>
    %97 = arith.mulf %95, %96 : vector<8x8xf32>
    %cst_39 = arith.constant 2.000000e+00 : f32
    %98 = vector.broadcast %cst_39 : f32 to vector<8x8xf32>
    %99 = arith.mulf %98, %97 : vector<8x8xf32>
    %100 = vector.broadcast %94 : vector<8x1xf32> to vector<8x8xf32>
    %101 = arith.addf %100, %99 : vector<8x8xf32>
    %102 = vector.extract_strided_slice %101 {offsets = [0, 0], sizes = [8, 1], strides = [1, 1]} : vector<8x8xf32> to vector<8x1xf32>
    %103 = vector.extract_strided_slice %94 {offsets = [0, 0], sizes = [1, 1], strides = [1, 1]} : vector<8x1xf32> to vector<1x1xf32>
    %104 = vector.broadcast %103 : vector<1x1xf32> to vector<8x1xf32>
    %105 = arith.addf %102, %104 : vector<8x1xf32>
    %cst_40 = arith.constant 9.99999974E-6 : f32
    %106 = vector.broadcast %cst_40 : f32 to vector<8x1xf32>
    %107 = arith.addf %105, %106 : vector<8x1xf32>
    %108 = math.rsqrt %107 : vector<8x1xf32>
    %109 = vector.extract_strided_slice %89 {offsets = [0, 0], sizes = [1, 32], strides = [1, 1]} : vector<8x32xf32> to vector<1x32xf32>
    %110 = vector.broadcast %109 : vector<1x32xf32> to vector<8x32xf32>
    %111 = arith.addf %89, %110 : vector<8x32xf32>
    %112 = vector.broadcast %108 : vector<8x1xf32> to vector<8x32xf32>
    %113 = arith.mulf %111, %112 : vector<8x32xf32>
    %114 = vector.broadcast %10 : vector<1x32xf32> to vector<8x32xf32>
    %115 = arith.mulf %113, %114 : vector<8x32xf32>
    %116 = vector.broadcast %11 : vector<1x32xf32> to vector<8x32xf32>
    %117 = arith.addf %115, %116 : vector<8x32xf32>
    %118 = vector.extract_strided_slice %101 {offsets = [0, 1], sizes = [8, 1], strides = [1, 1]} : vector<8x8xf32> to vector<8x1xf32>
    %119 = vector.extract_strided_slice %94 {offsets = [1, 0], sizes = [1, 1], strides = [1, 1]} : vector<8x1xf32> to vector<1x1xf32>
    %120 = vector.broadcast %119 : vector<1x1xf32> to vector<8x1xf32>
    %121 = arith.addf %118, %120 : vector<8x1xf32>
    %cst_41 = arith.constant 9.99999974E-6 : f32
    %122 = vector.broadcast %cst_41 : f32 to vector<8x1xf32>
    %123 = arith.addf %121, %122 : vector<8x1xf32>
    %124 = math.rsqrt %123 : vector<8x1xf32>
    %125 = vector.extract_strided_slice %89 {offsets = [1, 0], sizes = [1, 32], strides = [1, 1]} : vector<8x32xf32> to vector<1x32xf32>
    %126 = vector.broadcast %125 : vector<1x32xf32> to vector<8x32xf32>
    %127 = arith.addf %89, %126 : vector<8x32xf32>
    %128 = vector.broadcast %124 : vector<8x1xf32> to vector<8x32xf32>
    %129 = arith.mulf %127, %128 : vector<8x32xf32>
    %130 = vector.broadcast %10 : vector<1x32xf32> to vector<8x32xf32>
    %131 = arith.mulf %129, %130 : vector<8x32xf32>
    %132 = vector.broadcast %11 : vector<1x32xf32> to vector<8x32xf32>
    %133 = arith.addf %131, %132 : vector<8x32xf32>
    %134 = vector.extract_strided_slice %101 {offsets = [0, 2], sizes = [8, 1], strides = [1, 1]} : vector<8x8xf32> to vector<8x1xf32>
    %135 = vector.extract_strided_slice %94 {offsets = [2, 0], sizes = [1, 1], strides = [1, 1]} : vector<8x1xf32> to vector<1x1xf32>
    %136 = vector.broadcast %135 : vector<1x1xf32> to vector<8x1xf32>
    %137 = arith.addf %134, %136 : vector<8x1xf32>
    %cst_42 = arith.constant 9.99999974E-6 : f32
    %138 = vector.broadcast %cst_42 : f32 to vector<8x1xf32>
    %139 = arith.addf %137, %138 : vector<8x1xf32>
    %140 = math.rsqrt %139 : vector<8x1xf32>
    %141 = vector.extract_strided_slice %89 {offsets = [2, 0], sizes = [1, 32], strides = [1, 1]} : vector<8x32xf32> to vector<1x32xf32>
    %142 = vector.broadcast %141 : vector<1x32xf32> to vector<8x32xf32>
    %143 = arith.addf %89, %142 : vector<8x32xf32>
    %144 = vector.broadcast %140 : vector<8x1xf32> to vector<8x32xf32>
    %145 = arith.mulf %143, %144 : vector<8x32xf32>
    %146 = vector.broadcast %10 : vector<1x32xf32> to vector<8x32xf32>
    %147 = arith.mulf %145, %146 : vector<8x32xf32>
    %148 = vector.broadcast %11 : vector<1x32xf32> to vector<8x32xf32>
    %149 = arith.addf %147, %148 : vector<8x32xf32>
    %150 = vector.extract_strided_slice %101 {offsets = [0, 3], sizes = [8, 1], strides = [1, 1]} : vector<8x8xf32> to vector<8x1xf32>
    %151 = vector.extract_strided_slice %94 {offsets = [3, 0], sizes = [1, 1], strides = [1, 1]} : vector<8x1xf32> to vector<1x1xf32>
    %152 = vector.broadcast %151 : vector<1x1xf32> to vector<8x1xf32>
    %153 = arith.addf %150, %152 : vector<8x1xf32>
    %cst_43 = arith.constant 9.99999974E-6 : f32
    %154 = vector.broadcast %cst_43 : f32 to vector<8x1xf32>
    %155 = arith.addf %153, %154 : vector<8x1xf32>
    %156 = math.rsqrt %155 : vector<8x1xf32>
    %157 = vector.extract_strided_slice %89 {offsets = [3, 0], sizes = [1, 32], strides = [1, 1]} : vector<8x32xf32> to vector<1x32xf32>
    %158 = vector.broadcast %157 : vector<1x32xf32> to vector<8x32xf32>
    %159 = arith.addf %89, %158 : vector<8x32xf32>
    %160 = vector.broadcast %156 : vector<8x1xf32> to vector<8x32xf32>
    %161 = arith.mulf %159, %160 : vector<8x32xf32>
    %162 = vector.broadcast %10 : vector<1x32xf32> to vector<8x32xf32>
    %163 = arith.mulf %161, %162 : vector<8x32xf32>
    %164 = vector.broadcast %11 : vector<1x32xf32> to vector<8x32xf32>
    %165 = arith.addf %163, %164 : vector<8x32xf32>
    %166 = vector.extract_strided_slice %101 {offsets = [0, 4], sizes = [8, 1], strides = [1, 1]} : vector<8x8xf32> to vector<8x1xf32>
    %167 = vector.extract_strided_slice %94 {offsets = [4, 0], sizes = [1, 1], strides = [1, 1]} : vector<8x1xf32> to vector<1x1xf32>
    %168 = vector.broadcast %167 : vector<1x1xf32> to vector<8x1xf32>
    %169 = arith.addf %166, %168 : vector<8x1xf32>
    %cst_44 = arith.constant 9.99999974E-6 : f32
    %170 = vector.broadcast %cst_44 : f32 to vector<8x1xf32>
    %171 = arith.addf %169, %170 : vector<8x1xf32>
    %172 = math.rsqrt %171 : vector<8x1xf32>
    %173 = vector.extract_strided_slice %89 {offsets = [4, 0], sizes = [1, 32], strides = [1, 1]} : vector<8x32xf32> to vector<1x32xf32>
    %174 = vector.broadcast %173 : vector<1x32xf32> to vector<8x32xf32>
    %175 = arith.addf %89, %174 : vector<8x32xf32>
    %176 = vector.broadcast %172 : vector<8x1xf32> to vector<8x32xf32>
    %177 = arith.mulf %175, %176 : vector<8x32xf32>
    %178 = vector.broadcast %10 : vector<1x32xf32> to vector<8x32xf32>
    %179 = arith.mulf %177, %178 : vector<8x32xf32>
    %180 = vector.broadcast %11 : vector<1x32xf32> to vector<8x32xf32>
    %181 = arith.addf %179, %180 : vector<8x32xf32>
    %182 = vector.extract_strided_slice %101 {offsets = [0, 5], sizes = [8, 1], strides = [1, 1]} : vector<8x8xf32> to vector<8x1xf32>
    %183 = vector.extract_strided_slice %94 {offsets = [5, 0], sizes = [1, 1], strides = [1, 1]} : vector<8x1xf32> to vector<1x1xf32>
    %184 = vector.broadcast %183 : vector<1x1xf32> to vector<8x1xf32>
    %185 = arith.addf %182, %184 : vector<8x1xf32>
    %cst_45 = arith.constant 9.99999974E-6 : f32
    %186 = vector.broadcast %cst_45 : f32 to vector<8x1xf32>
    %187 = arith.addf %185, %186 : vector<8x1xf32>
    %188 = math.rsqrt %187 : vector<8x1xf32>
    %189 = vector.extract_strided_slice %89 {offsets = [5, 0], sizes = [1, 32], strides = [1, 1]} : vector<8x32xf32> to vector<1x32xf32>
    %190 = vector.broadcast %189 : vector<1x32xf32> to vector<8x32xf32>
    %191 = arith.addf %89, %190 : vector<8x32xf32>
    %192 = vector.broadcast %188 : vector<8x1xf32> to vector<8x32xf32>
    %193 = arith.mulf %191, %192 : vector<8x32xf32>
    %194 = vector.broadcast %10 : vector<1x32xf32> to vector<8x32xf32>
    %195 = arith.mulf %193, %194 : vector<8x32xf32>
    %196 = vector.broadcast %11 : vector<1x32xf32> to vector<8x32xf32>
    %197 = arith.addf %195, %196 : vector<8x32xf32>
    %198 = vector.extract_strided_slice %101 {offsets = [0, 6], sizes = [8, 1], strides = [1, 1]} : vector<8x8xf32> to vector<8x1xf32>
    %199 = vector.extract_strided_slice %94 {offsets = [6, 0], sizes = [1, 1], strides = [1, 1]} : vector<8x1xf32> to vector<1x1xf32>
    %200 = vector.broadcast %199 : vector<1x1xf32> to vector<8x1xf32>
    %201 = arith.addf %198, %200 : vector<8x1xf32>
    %cst_46 = arith.constant 9.99999974E-6 : f32
    %202 = vector.broadcast %cst_46 : f32 to vector<8x1xf32>
    %203 = arith.addf %201, %202 : vector<8x1xf32>
    %204 = math.rsqrt %203 : vector<8x1xf32>
    %205 = vector.extract_strided_slice %89 {offsets = [6, 0], sizes = [1, 32], strides = [1, 1]} : vector<8x32xf32> to vector<1x32xf32>
    %206 = vector.broadcast %205 : vector<1x32xf32> to vector<8x32xf32>
    %207 = arith.addf %89, %206 : vector<8x32xf32>
    %208 = vector.broadcast %204 : vector<8x1xf32> to vector<8x32xf32>
    %209 = arith.mulf %207, %208 : vector<8x32xf32>
    %210 = vector.broadcast %10 : vector<1x32xf32> to vector<8x32xf32>
    %211 = arith.mulf %209, %210 : vector<8x32xf32>
    %212 = vector.broadcast %11 : vector<1x32xf32> to vector<8x32xf32>
    %213 = arith.addf %211, %212 : vector<8x32xf32>
    %214 = vector.extract_strided_slice %101 {offsets = [0, 7], sizes = [8, 1], strides = [1, 1]} : vector<8x8xf32> to vector<8x1xf32>
    %215 = vector.extract_strided_slice %94 {offsets = [7, 0], sizes = [1, 1], strides = [1, 1]} : vector<8x1xf32> to vector<1x1xf32>
    %216 = vector.broadcast %215 : vector<1x1xf32> to vector<8x1xf32>
    %217 = arith.addf %214, %216 : vector<8x1xf32>
    %cst_47 = arith.constant 9.99999974E-6 : f32
    %218 = vector.broadcast %cst_47 : f32 to vector<8x1xf32>
    %219 = arith.addf %217, %218 : vector<8x1xf32>
    %220 = math.rsqrt %219 : vector<8x1xf32>
    %221 = vector.extract_strided_slice %89 {offsets = [7, 0], sizes = [1, 32], strides = [1, 1]} : vector<8x32xf32> to vector<1x32xf32>
    %222 = vector.broadcast %221 : vector<1x32xf32> to vector<8x32xf32>
    %223 = arith.addf %89, %222 : vector<8x32xf32>
    %224 = vector.broadcast %220 : vector<8x1xf32> to vector<8x32xf32>
    %225 = arith.mulf %223, %224 : vector<8x32xf32>
    %226 = vector.broadcast %10 : vector<1x32xf32> to vector<8x32xf32>
    %227 = arith.mulf %225, %226 : vector<8x32xf32>
    %228 = vector.broadcast %11 : vector<1x32xf32> to vector<8x32xf32>
    %229 = arith.addf %227, %228 : vector<8x32xf32>
    %230 = tpu.concatenate %117, %133, %149, %165, %181, %197, %213, %229 in 1 : vector<8x32xf32>, vector<8x32xf32>, vector<8x32xf32>, vector<8x32xf32>, vector<8x32xf32>, vector<8x32xf32>, vector<8x32xf32>, vector<8x32xf32> -> vector<8x256xf32>
    %c0_48 = arith.constant 0 : index
    %c0_49 = arith.constant 0 : index
    %231 = vector.load %arg2[%c0_48, %c0_49] : memref<8x256xf32, #tpu.memory_space<vmem>>, vector<8x256xf32>
    tpu.vector_store %arg2[%c0_48, %c0_49], %230 {strides = array<i32>} : memref<8x256xf32, #tpu.memory_space<vmem>>, vector<8x256xf32>,
    return
  }
}

</mosaic_0001>

<bundles_post_ra>
// kernel: tpu_custom_call.1
= control target key start
LH: loop header
LB: loop body
LE: loop exit
PB: predicated region body
PF: predicated region fallthrough
CT: control target
= control target key end

     0   :  { %7 = vsyncpa [#allocation3], 0  ;;  %s2026_s0 = inlined_call_operand.hbm [shape: f32[8,32], index: 0, kind: input, shape index: {}]   ;;  %s2027_s1 = inlined_call_operand.hbm [shape: f32[136,128], index: 1, kind: input, shape index: {}]   ;;  %s2028_s2 = inlined_call_operand.hbm [shape: f32[8,256], index: 2, kind: output, shape index: {}]  }
   0x1   :  { %8 = vsyncpa [#allocation6], 0 }
   0x2   :  { %9 = vsyncpa [#allocation4], 0  ;;  %s1745_s9 = smov [#allocation2]   ;;  %s1746_s11 = smov [#allocation5]  }
   0x3   :  { %s16_s10 = sshll.u32 %s1745_s9, 4  ;;  %s25_s12 = sshll.u32 %s1746_s11, 4  ;;  %s17_s10 = int_to_ptr.vmem [resolvable:$true] %s16_s10  ;;  %s1790_s12 = int_to_ptr.vmem [resolvable:$true] %s25_s12 }
   0x4   :  { %s1673_s15 = scalar_lea.hbm %s2026_s0, 128 }
   0x5   :  { %p1674_p0 = scmp.ne.s32.totalorder %s2026_s0, %s1673_s15  ;;  %p1677_p1 = scmp.lt.u32.totalorder %s1673_s15, %s2026_s0 }
   0x7   :  { %p1679_p2 = pnand %p1677_p1, %p1674_p0 }
   0x9   :  { %1682 = shalt.err (!%p1679_p2)
}
   0xa   :  { %s1683_s20 = scalar_lea.vmem %s17_s10, 128  ;;  %p1688_p4 = scmp.lt.s32.totalorder %s17_s10, %s17_s10 }
   0xb   :  { %p1684_p3 = scmp.ne.s32.totalorder %s17_s10, %s1683_s20  ;;  %p1689_p5 = scmp.lt.s32.totalorder %s1683_s20, %s1683_s20 }
   0xd   :  { %p1690_p6 = por %p1689_p5, %p1688_p4 }
   0xf   :  { %p1691_p7 = pnand %p1690_p6, %p1684_p3 }
  0x11   :  { %1694 = shalt.err (!%p1691_p7)
}
  0x12   :  { %19 = dma.hbm_to_vmem [thread:$0]  %s2026_s0, 128, %s17_s10, [#allocation3]  }
  0x13   :  { %s1695_s25 = scalar_lea.hbm %s2027_s1, 2176 }
  0x14   :  { %p1696_p8 = scmp.ne.s32.totalorder %s2027_s1, %s1695_s25  ;;  %p1699_p9 = scmp.lt.u32.totalorder %s1695_s25, %s2027_s1 }
  0x16   :  { %p1701_p10 = pnand %p1699_p9, %p1696_p8 }
  0x18   :  { %1704 = shalt.err (!%p1701_p10)
}
  0x19   :  { %s1705_s30 = scalar_lea.vmem %s1790_s12, 2176  ;;  %p1710_p12 = scmp.lt.s32.totalorder %s1790_s12, %s1790_s12 }
  0x1a   :  { %p1706_p11 = scmp.ne.s32.totalorder %s1790_s12, %s1705_s30  ;;  %p1711_p13 = scmp.lt.s32.totalorder %s1705_s30, %s1705_s30 }
  0x1c   :  { %p1712_p0 = por %p1711_p13, %p1710_p12 }
  0x1e   :  { %p1713_p1 = pnand %p1712_p0, %p1706_p11 }
  0x20   :  { %1716 = shalt.err (!%p1713_p1)
}
  0x21   :  { %s1747_s0 = smov 128   ;;  %s1748_s3 = smov 8  }
  0x22   :  { %31 = dma.hbm_to_vmem [thread:$0]  %s2027_s1, 2176, %s1790_s12, [#allocation6], %s1747_s0, %s1747_s0, %s1748_s3  }
  0x23   :  { %1739 = dma.done.wait [#allocation3], 128  }
  0x24   :  { %1740 = vsyncadd [#allocation3], 4294967168 }
  0x25   :  { %1741 = dma.done.wait [#allocation6], 2176  }
  0x26   :  { %1742 = vsyncadd [#allocation6], 4294965120  ;;  %v1749_v0 = vmov 0.0|0.0   ;;  %vm1750_vm0 = vmmov 0   ;;  %v1751_v1 = vmov 0.0   ;;  %v1828_v2 = vld [vmem:[#allocation5] sm:$0xff] }
  0x27   :  { %1560 = vmatprep.subr.bf16.mxu1 %v1749_v0  ;;  %1471 = vmatprep.mubr.msk.f32.mxu1 %vm1750_vm0, %v1751_v1  ;;  %v1830_v3 = vld [vmem:[#allocation5 + $0x8] sm:$0xff]  ;;  %v1832_v4 = vld [vmem:[#allocation5 + $0x10] sm:$0xff]  ;;  %v1838_v7 = vld [vmem:[#allocation5 + $0x18] sm:$0xff]  ;;  %vm67_vm1 = vcmask 261120   ;;  %s1752_s1 = smov 120   ;;  %s1753_s6 = smov 96  }
  0x28   :  { %1484 = vmatprep.subr.mxu0 %v1751_v1  ;;  %1486 = vmatprep.mubr.msk.f32.mxu0 %vm1750_vm0, %v1751_v1  ;;  %v1620_v5 = vpack.i.bf16 %v1830_v3, %v1828_v2  ;;  %v1561_v6 = vpack.c.bf16 %v1830_v3, %v1828_v2  ;;  %v1564_v8 = vpack.c.bf16 %v1838_v7, %v1832_v4  ;;  %v1843_v9 = vld [vmem:[#allocation2] sm:$0xff]  ;;  %v1395_v10 = vld [vmem:[#allocation5 + $0x80] ss:$0 sm:$0xff]  ;;  %s1754_s7 = smov 80   ;;  %s1755_s8 = smov 88   ;;  %vm144_vm2 = vcmask 64512  }
  0x29   :  { %s1756_s9 = smov 112   ;;  %s1757_s10 = smov 72   ;;  %vm814_vm3 = vcmask 130048   ;;  %vm816_vm4 = vcmask 195584   ;;  %vm1018_vm5 = vcmask 523264   ;;  %vm1372_vm6 = vcmask 785408  }
  0x2a   :  { %1562 = vmatpush3.bf16.msra.mxu1 %v1561_v6  ;;  %s1758_s11 = smov 104   ;;  %s1759_s12 = smov 56  }
  0x2b   :  { %1563 = vmatprep.subr.bf16.mxu1 %v1749_v0  ;;  %s1760_s13 = smov 64   ;;  %s1761_s14 = smov 48  }
  0x2c   :  { %s1762_s15 = smov 40   ;;  %s1763_s16 = smov 32  }
  0x2d   :  { %s1764_s17 = smov 16   ;;  %s1765_s18 = smov 24  }
  0x2e   :  { %1565 = vmatpush3.bf16.msra.mxu1 %v1564_v8  ;;  %s1774_s19 = smov [#allocation7]  }
  0x2f   :  { %1474 = vmatprep.subr.mxu1 %v1751_v1  ;;  %s1385_s20 = sshll.u32 %s1774_s19, 4  ;;  %s1386_s20 = int_to_ptr.vmem [resolvable:$true] %s1385_s20 }
  0x30   :  { %s1717_s21 = scalar_lea.vmem %s1386_s20, 256  ;;  %p1722_p3 = scmp.lt.s32.totalorder %s1386_s20, %s1386_s20 }
  0x31   :  { %1472 = vmatmul.mubr.msk.f32.vlgmr.msra.gmra.mrb[0].mxu1 %vm67_vm1, %v1843_v9  ;;  %p1718_p2 = scmp.ne.s32.totalorder %s1386_s20, %s1717_s21  ;;  %p1723_p4 = scmp.lt.s32.totalorder %s1717_s21, %s1717_s21 }
  0x32   :  { %1476 = vmatprep.mubr.msk.f32.mxu1 %vm1750_vm0, %v1751_v1 }
  0x33   :  { %p1724_p5 = por %p1723_p4, %p1722_p3 }
  0x35   :  { %p1725_p6 = pnand %p1724_p5, %p1718_p2 }
 0x104   :  { %v137_v11 = vpop.f32.mrb[0].mxu1 }
 0x105   :  { %v1850_v12 = vadd.f32 %v1395_v10, %v137_v11  ;;  %v1473_v13 = vpop.f32.mrb[1].mxu1 }
 0x106   :  { %v1625_v13 = vpack.i.bf16 %v1838_v7, %v1832_v4 }
 0x107   :  { %219 = vrot.lane.b32.xlu1 %v1850_v12, %s1752_s1  ;;  %142 = vrot.lane.b32.xlu0 %v1850_v12, %s1753_s6 }
 0x10b   :  { %299 = vrot.lane.b32.xlu1 %v1850_v12, %s1754_s7  ;;  %221 = vrot.lane.b32.xlu0 %v1850_v12, %s1755_s8 }
 0x10f   :  { %297 = vrot.lane.b32.xlu1 %v1850_v12, %s1756_s9  ;;  %377 = vrot.lane.b32.xlu0 %v1850_v12, %s1757_s10 }
 0x113   :  { %375 = vrot.lane.b32.xlu0 %v1850_v12, %s1758_s11 }
 0x179   :  { %v220_v14 = vpop.permute.xlu1 %219  ;;  %v143_v15 = vpop.permute.xlu0 %142 }
 0x17a   :  { %1475 = vmatpush3.xpose.msk.msra.mxu1 %vm144_vm2, %v143_v15 }
 0x17b   :  { %1479 = vmatprep.subr.mxu1 %v1751_v1 }
 0x17d   :  { %v300_v16 = vpop.permute.xlu1 %299  ;;  %1477 = vmatmul.mubr.msk.f32.vlgmr.msra.gmra.mrb[2].mxu1 %vm144_vm2, %v1850_v12  ;;  %v222_v17 = vpop.permute.xlu0 %221 }
 0x17e   :  { %1480 = vmatpush3.xpose.msk.msra.mxu1 %vm144_vm2, %v222_v17  ;;  %1485 = vmatpush3.xpose.msk.msra.mxu0 %vm144_vm2, %v300_v16 }
 0x17f   :  { %1481 = vmatprep.mubr.msk.f32.mxu1 %vm1750_vm0, %v1751_v1  ;;  %1489 = vmatprep.subr.mxu1 %v1751_v1 }
 0x180   :  { %1494 = vmatprep.subr.mxu0 %v1751_v1 }
 0x181   :  { %v298_v18 = vpop.permute.xlu1 %297  ;;  %1482 = vmatmul.mubr.msk.f32.vlgmr.msra.gmra.mrb[4].mxu1 %vm144_vm2, %v220_v14  ;;  %v378_v19 = vpop.permute.xlu0 %377 }
 0x182   :  { %1487 = vmatmul.mubr.msk.f32.vlgmr.msra.gmra.mrb[0].mxu0 %vm144_vm2, %v298_v18  ;;  %1490 = vmatpush3.xpose.msk.msra.mxu1 %vm144_vm2, %v378_v19 }
 0x183   :  { %1491 = vmatprep.mubr.msk.f32.mxu1 %vm1750_vm0, %v1751_v1  ;;  %1499 = vmatprep.subr.mxu1 %v1751_v1 }
 0x184   :  { %1496 = vmatprep.mubr.msk.f32.mxu0 %vm1750_vm0, %v1751_v1 }
 0x185   :  { %v376_v20 = vpop.permute.xlu0 %375 }
 0x186   :  { %1492 = vmatmul.mubr.msk.f32.vlgmr.msra.gmra.mrb[6].mxu1 %vm144_vm2, %v376_v20 }
 0x187   :  { %1501 = vmatprep.mubr.msk.f32.mxu1 %vm1750_vm0, %v1751_v1 }
 0x250   :  { %v215_v21 = vpop.f32.mrb[2].mxu1 }
 0x251   :  { %v1478_v22 = vpop.f32.mrb[3].mxu1  ;;  %v453_v23 = vsel %vm144_vm2, %v215_v21, -inf }
 0x252   :  { %454 = vmax.xlane.f32.xlu1 %v453_v23 }
 0x254   :  { %v293_v24 = vpop.f32.mrb[4].mxu1 }
 0x255   :  { %v1483_v25 = vpop.f32.mrb[5].mxu1  ;;  %v371_v26 = vpop.f32.mrb[0].mxu0  ;;  %v456_v27 = vsel %vm144_vm2, %v293_v24, -inf }
 0x256   :  { %v1488_v28 = vpop.f32.mrb[1].mxu0  ;;  %457 = vmax.xlane.f32.xlu0 %v456_v27  ;;  %v459_v30 = vsel %vm144_vm2, %v371_v26, -inf }
 0x259   :  { %v449_v29 = vpop.f32.mrb[6].mxu1 }
 0x25a   :  { %460 = vmax.xlane.f32.xlu0 %v459_v30  ;;  %v1493_v31 = vpop.f32.mrb[7].mxu1  ;;  %v462_v32 = vsel %vm144_vm2, %v449_v29, -inf }
 0x25b   :  { %463 = vmax.xlane.f32.xlu1 %v462_v32  ;;  %v1409_v31 = vld [vmem:[#allocation5 + $0x81] ss:$0 sm:$0xff] }
 0x26c   :  { %573 = vrot.lane.b32.xlu1 %v1850_v12, %s1759_s12 }
 0x270   :  { %497 = vrot.lane.b32.xlu0 %v1850_v12, %s1760_s13 }
 0x2df   :  { %v455_v33 = vpop.xlane.xlu1 %454 }
 0x2e0   :  { %v465_v34 = vsub.f32 %v215_v21, %v455_v33 }
 0x2e2   :  { %v469_v35 = vmul.f32 1.442695, %v465_v34 }
 0x2e3   :  { %v458_v36 = vpop.xlane.xlu0 %457 }
 0x2e4   :  { %1639 = vpow2.f32 %v469_v35  ;;  %v466_v37 = vsub.f32 %v293_v24, %v458_v36 }
 0x2e6   :  { %v471_v38 = vmul.f32 1.442695, %v466_v37 }
 0x2e7   :  { %v461_v39 = vpop.xlane.xlu0 %460 }
 0x2e8   :  { %1641 = vpow2.f32 %v471_v38  ;;  %v467_v40 = vsub.f32 %v371_v26, %v461_v39  ;;  %v464_v41 = vpop.xlane.xlu1 %463 }
 0x2e9   :  { %v468_v42 = vsub.f32 %v449_v29, %v464_v41 }
 0x2ea   :  { %v473_v43 = vmul.f32 1.442695, %v467_v40 }
 0x2eb   :  { %v475_v44 = vmul.f32 1.442695, %v468_v42  ;;  %v498_v45 = vpop.permute.xlu0 %497  ;;  %v43_v42 = vld [vmem:[#allocation5 + $0x20] sm:$0xff] }
 0x2ec   :  { %1643 = vpow2.f32 %v473_v43  ;;  %1495 = vmatpush3.msra.mxu0 %v498_v45  ;;  %v574_v46 = vpop.permute.xlu1 %573  ;;  %v44_v43 = vld [vmem:[#allocation5 + $0x28] sm:$0xff]  ;;  %v45_v45 = vld [vmem:[#allocation5 + $0x30] sm:$0xff] }
 0x2ed   :  { %1645 = vpow2.f32 %v475_v44  ;;  %1500 = vmatpush3.msra.mxu1 %v574_v46  ;;  %1504 = vmatprep.subr.mxu0 %v1751_v1  ;;  %v1573_v44 = vpack.c.bf16 %v44_v43, %v43_v42  ;;  %v46_v46 = vld [vmem:[#allocation5 + $0x38] sm:$0xff] }
 0x2ee   :  { %v1640_v47 = vpop.eup %1639  ;;  %1509 = vmatprep.subr.mxu1 %v1751_v1 }
 0x2ef   :  { %v477_v48 = vsel %vm144_vm2, %v1640_v47, 0.0 }
 0x2f0   :  { %478 = vadd.xlane.f32.xlu0 %v477_v48  ;;  %v48_v48 = vld [vmem:[#allocation5 + $0x48] sm:$0xff] }
 0x2f2   :  { %v1642_v49 = vpop.eup %1641 }
 0x2f3   :  { %v480_v50 = vsel %vm144_vm2, %v1642_v49, 0.0 }
 0x2f4   :  { %481 = vadd.xlane.f32.xlu1 %v480_v50 }
 0x2f6   :  { %v1644_v51 = vpop.eup %1643 }
 0x2f7   :  { %v1646_v52 = vpop.eup %1645  ;;  %v483_v53 = vsel %vm144_vm2, %v1644_v51, 0.0 }
 0x2f8   :  { %484 = vadd.xlane.f32.xlu0 %v483_v53  ;;  %v486_v54 = vsel %vm144_vm2, %v1646_v52, 0.0  ;;  %v51_v53 = vld [vmem:[#allocation5 + $0x60] sm:$0xff] }
 0x2f9   :  { %487 = vadd.xlane.f32.xlu1 %v486_v54  ;;  %v52_v54 = vld [vmem:[#allocation5 + $0x68] sm:$0xff] }
 0x30a   :  { %649 = vrot.lane.b32.xlu1 %v1850_v12, %s1761_s14 }
 0x30e   :  { %725 = vrot.lane.b32.xlu0 %v1850_v12, %s1762_s15  ;;  %1621 = vrot.lane.b32.xlu1 %v1620_v5, %s1763_s16 }
 0x312   :  { %1626 = vrot.lane.b32.xlu0 %v1625_v13, %s1763_s16 }
 0x37d   :  { %v479_v55 = vpop.xlane.xlu0 %478 }
 0x37e   :  { %1647 = vrcp.f32 %v479_v55  ;;  %v1585_v55 = vpack.c.bf16 %v52_v54, %v51_v53 }
 0x381   :  { %v482_v56 = vpop.xlane.xlu1 %481 }
 0x382   :  { %1649 = vrcp.f32 %v482_v56 }
 0x385   :  { %v485_v57 = vpop.xlane.xlu0 %484 }
 0x386   :  { %1651 = vrcp.f32 %v485_v57  ;;  %v488_v58 = vpop.xlane.xlu1 %487 }
 0x387   :  { %1653 = vrcp.f32 %v488_v58 }
 0x388   :  { %v1648_v59 = vpop.eup %1647 }
 0x389   :  { %v493_v60 = vmul.f32 %v1648_v59, %v1640_v47  ;;  %v726_v6 = vpop.permute.xlu0 %725  ;;  %v1576_v47 = vpack.c.bf16 %v46_v46, %v45_v45 }
 0x38a   :  { %v650_v61 = vpop.permute.xlu1 %649 }
 0x38b   :  { %1497 = vmatmul.mubr.msk.f32.vlgmr.msra.gmra.mrb[2].mxu0 %vm144_vm2, %v493_v60  ;;  %v1411_v60 = vld [vmem:[#allocation5 + $0x83] ss:$0 sm:$0xff] }
 0x38c   :  { %v1650_v62 = vpop.eup %1649  ;;  %1505 = vmatpush3.msra.mxu0 %v650_v61  ;;  %1506 = vmatprep.mubr.msk.f32.mxu0 %vm1750_vm0, %v1751_v1 }
 0x38d   :  { %v494_v63 = vmul.f32 %v1650_v62, %v1642_v49  ;;  %1566 = vmatprep.subr.bf16.mxu0 %v1749_v0  ;;  %v1627_v17 = vpop.permute.xlu0 %1626  ;;  %v49_v49 = vld [vmem:[#allocation5 + $0x50] sm:$0xff]  ;;  %v1412_v62 = vld [vmem:[#allocation5 + $0x84] ss:$0 sm:$0xff] }
 0x38e   :  { %v1622_v14 = vpop.permute.xlu1 %1621  ;;  %v1629_v19 = vunpack.i.h.bf16 %v1627_v17  ;;  %v1628_v20 = vunpack.i.l.bf16 %v1627_v17 }
 0x38f   :  { %1502 = vmatmul.mubr.msk.f32.vlgmr.msra.gmra.mrb[8].mxu1 %vm144_vm2, %v494_v63  ;;  %v1624_v15 = vunpack.i.h.bf16 %v1622_v14  ;;  %v1623_v16 = vunpack.i.l.bf16 %v1622_v14 }
 0x390   :  { %v1652_v8 = vpop.eup %1651  ;;  %1510 = vmatpush3.msra.mxu1 %v726_v6  ;;  %1511 = vmatprep.mubr.msk.f32.mxu1 %vm1750_vm0, %v1751_v1  ;;  %v1570_v21 = vpack.c.bf16 %v1629_v19, %v1628_v20 }
 0x391   :  { %v1654_v10 = vpop.eup %1653  ;;  %v495_v11 = vmul.f32 %v1652_v8, %v1644_v51  ;;  %1572 = vmatprep.subr.bf16.mxu1 %v1749_v0  ;;  %v1567_v18 = vpack.c.bf16 %v1624_v15, %v1623_v16  ;;  %v50_v51 = vld [vmem:[#allocation5 + $0x58] sm:$0xff]  ;;  %v53_v8 = vld [vmem:[#allocation5 + $0x70] sm:$0xff]  ;;  %v1415_v16 = vld [vmem:[#allocation5 + $0x82] ss:$0 sm:$0xff] }
 0x392   :  { %v496_v12 = vmul.f32 %v1654_v10, %v1646_v52  ;;  %v1582_v52 = vpack.c.bf16 %v50_v51, %v49_v49  ;;  %v54_v10 = vld [vmem:[#allocation5 + $0x78] sm:$0xff] }
 0x393   :  { %1507 = vmatmul.mubr.msk.f32.vlgmr.msra.gmra.mrb[4].mxu0 %vm144_vm2, %v495_v11  ;;  %v1588_v11 = vpack.c.bf16 %v54_v10, %v53_v8 }
 0x394   :  { %1512 = vmatmul.mubr.msk.f32.vlgmr.msra.gmra.mrb[10].mxu1 %vm144_vm2, %v496_v12  ;;  %1522 = vmatprep.mubr.msk.f32.mxu0 %vm1750_vm0, %v1751_v1 }
 0x395   :  { %1533 = vmatprep.mubr.msk.f32.mxu1 %vm1750_vm0, %v1751_v1  ;;  %1568 = vmatpush3.bf16.msra.mxu0 %v1567_v18 }
 0x396   :  { %1569 = vmatprep.subr.bf16.mxu0 %v1749_v0  ;;  %1574 = vmatpush3.bf16.msra.mxu1 %v1573_v44 }
 0x397   :  { %1575 = vmatprep.subr.bf16.mxu1 %v1749_v0 }
 0x399   :  { %1571 = vmatpush3.bf16.msra.mxu0 %v1570_v21 }
 0x39a   :  { %1578 = vmatprep.subr.bf16.mxu0 %v1749_v0  ;;  %1577 = vmatpush3.bf16.msra.mxu1 %v1576_v47 }
 0x39b   :  { %1555 = vmatprep.subr.mxu1 %v1751_v1 }
 0x45e   :  { %v569_v2 = vpop.f32.mrb[2].mxu0 }
 0x45f   :  { %v1498_v3 = vpop.f32.mrb[3].mxu0 }
 0x462   :  { %v645_v5 = vpop.f32.mrb[8].mxu1 }
 0x463   :  { %802 = vrot.lane.b32.xlu1 %v645_v5, %s1748_s3  ;;  %v1503_v4 = vpop.f32.mrb[9].mxu1 }
 0x464   :  { %v1766_v4 = vmov 5  }
 0x465   :  { %1631 = vset.pattern.permute.xlu0 %v1766_v4 }
 0x466   :  { %v721_v7 = vpop.f32.mrb[4].mxu0 }
 0x467   :  { %806 = vrot.lane.b32.xlu0 %v721_v7, %s1764_s17  ;;  %v1508_v22 = vpop.f32.mrb[5].mxu0  ;;  %v797_v23 = vpop.f32.mrb[10].mxu1  ;;  %v1767_v7 = vmov 1  }
 0x468   :  { %810 = vrot.lane.b32.xlu1 %v797_v23, %s1765_s18  ;;  %v1513_v24 = vpop.f32.mrb[11].mxu1  ;;  %v1178_v22 = vlaneseq }
 0x469   :  { %1630 = vset.pattern.permute.xlu1 %v1767_v7 }
 0x46a   :  { %v1946_v24 = vshrl.u32 %v1178_v22, 7 }
 0x46c   :  { %v1308_v42 = vsub.s32 6, %v1946_v24  ;;  %v1248_v46 = vsub.s32 3, %v1946_v24  ;;  %v1328_v49 = vsub.s32 7, %v1946_v24 }
 0x4d5   :  { %v803_v25 = vpop.permute.xlu1 %802 }
 0x4d6   :  { %v813_v26 = vsel %vm144_vm2, %v569_v2, %v803_v25 }
 0x4d9   :  { %v807_v27 = vpop.permute.xlu0 %806 }
 0x4da   :  { %v815_v28 = vsel %vm814_vm3, %v813_v26, %v807_v27  ;;  %v811_v29 = vpop.permute.xlu1 %810 }
 0x4db   :  { %v817_v30 = vsel %vm816_vm4, %v815_v28, %v811_v29 }
 0x4dc   :  { %1523 = vmatmul.mubr.msk.f32.vlgmr.msra.gmra.mrb[6].mxu0 %vm67_vm1, %v817_v30  ;;  %v1288_v30 = vsub.s32 5, %v1946_v24 }
 0x4dd   :  { %1552 = vmatprep.mubr.msk.f32.mxu0 %vm1750_vm0, %v1751_v1 }
 0x5af   :  { %v907_v32 = vpop.f32.mrb[6].mxu0 }
 0x5b0   :  { %v908_v33 = vadd.f32 %v1409_v31, %v907_v32  ;;  %v1524_v34 = vpop.f32.mrb[7].mxu0  ;;  %v1208_v31 = vsub.s32 1, %v1946_v24 }
 0x5b2   :  { %v911_v35 = vadd.f32 %v908_v33, %v1843_v9  ;;  %v47_v9 = vld [vmem:[#allocation5 + $0x40] sm:$0xff] }
 0x5b3   :  { %v1579_v50 = vpack.c.bf16 %v48_v48, %v47_v9 }
 0x5b4   :  { %v912_v36 = vsel %vm67_vm1, %v911_v35, 0.0 }
 0x5b5   :  { %913 = vadd.xlane.f32.xlu0 %v912_v36  ;;  %1580 = vmatpush3.bf16.msra.mxu0 %v1579_v50 }
 0x5b6   :  { %1581 = vmatprep.subr.bf16.mxu0 %v1749_v0 }
 0x5b9   :  { %1583 = vmatpush3.bf16.msra.mxu0 %v1582_v52 }
 0x5ba   :  { %1584 = vmatprep.subr.bf16.mxu0 %v1749_v0 }
 0x5bd   :  { %1586 = vmatpush3.bf16.msra.mxu0 %v1585_v55  ;;  %v1180_v55 = vsub.s32 0, %v1946_v24 }
 0x5be   :  { %1587 = vmatprep.subr.bf16.mxu0 %v1749_v0  ;;  %v1413_v0 = vld [vmem:[#allocation5 + $0x87] ss:$0 sm:$0xff] }
 0x5c1   :  { %1589 = vmatpush3.bf16.msra.mxu0 %v1588_v11 }
 0x642   :  { %v914_v37 = vpop.xlane.xlu0 %913 }
 0x643   :  { %v916_v38 = vmul.f32 0.03125, %v914_v37 }
 0x645   :  { %v917_v39 = vsub.f32 %v911_v35, %v916_v38  ;;  %v1228_v35 = vsub.s32 2, %v1946_v24 }
 0x647   :  { %v918_v40 = vmul.f32 %v917_v39, %v917_v39 }
 0x649   :  { %v919_v41 = vsel %vm67_vm1, %v918_v40, 0.0 }
 0x64a   :  { %920 = vadd.xlane.f32.xlu1 %v919_v41 }
 0x6d7   :  { %v921_v56 = vpop.xlane.xlu1 %920 }
 0x6d8   :  { %v922_v57 = vmul.f32 0.03125, %v921_v56  ;;  %v1768_v56 = vmov 7  }
 0x6da   :  { %v923_v58 = vadd.f32 1e-05, %v922_v57 }
 0x6dc   :  { %1655 = vrsqrt.f32 %v923_v58  ;;  %v1769_v58 = vmov 2  }
 0x6e6   :  { %v1656_v59 = vpop.eup %1655 }
 0x6e7   :  { %v925_v61 = vmul.f32 %v1656_v59, %v917_v39 }
 0x6e9   :  { %v930_v63 = vmul.f32 %v1411_v60, %v925_v61 }
 0x6eb   :  { %v935_v6 = vadd.f32 %v1412_v62, %v930_v63  ;;  %v1268_v62 = vsub.s32 4, %v1946_v24 }
 0x6ed   :  { %1534 = vmatmul.mubr.msk.f32.vlgmr.msra.gmra.mrb[12].mxu1 %vm67_vm1, %v935_v6  ;;  %v1770_v6 = vmov 6  }
 0x6ee   :  { %1557 = vmatprep.mubr.msk.f32.mxu1 %vm1750_vm0, %v1751_v1 }
 0x7c0   :  { %v1009_v12 = vpop.f32.mrb[12].mxu1 }
 0x7c1   :  { %v1010_v13 = vadd.f32 %v1413_v0, %v1009_v12  ;;  %v1535_v14 = vpop.f32.mrb[13].mxu1  ;;  %v1771_v12 = vmov 3  }
 0x7c3   :  { %v1013_v15 = vmax.f32 %v1010_v13, 0.0 }
 0x7c5   :  { %1553 = vmatmul.mubr.msk.f32.vlgmr.msra.gmra.mrb[8].mxu0 %vm1018_vm5, %v1013_v15 }
 0x898   :  { %v1088_v17 = vpop.f32.mrb[8].mxu0 }
 0x899   :  { %v1089_v18 = vadd.f32 %v1415_v16, %v1088_v17  ;;  %v1554_v19 = vpop.f32.mrb[9].mxu0  ;;  %v1772_v16 = vmov 0  }
 0x89b   :  { %v1092_v20 = vsel %vm67_vm1, %v1089_v18, 0.0 }
 0x89c   :  { %1093 = vadd.xlane.f32.xlu0 %v1092_v20 }
 0x929   :  { %v1094_v1 = vpop.xlane.xlu0 %1093 }
 0x92a   :  { %v1095_v21 = vmul.f32 0.03125, %v1094_v1 }
 0x92c   :  { %v1937_v2 = vsub.f32 %v1089_v18, %v1095_v21  ;;  %v1773_v18 = vmov 4  }
 0x92e   :  { %1556 = vmatpush3.xpose.msk.msra.mxu1 %vm67_vm1, %v1937_v2  ;;  %v1097_v3 = vmul.f32 %v1937_v2, %v1937_v2  ;;  %v1296_v19 = vrot.slane %v1937_v2, %v1288_v30  ;;  %v1216_v20 = vrot.slane %v1937_v2, %v1208_v31  ;;  %v1236_v7 = vrot.slane %v1937_v2, %v1228_v35 }
 0x930   :  { %v1098_v5 = vsel %vm67_vm1, %v1097_v3, 0.0  ;;  %v1297_v1 = vadd.f32 %v1296_v19, %v1937_v2  ;;  %v1217_v3 = vadd.f32 %v1216_v20, %v1937_v2 }
 0x931   :  { %1558 = vmatmul.mubr.msk.f32.vlgmr.msra.gmra.mrb[14].mxu1 %vm67_vm1, %v1937_v2  ;;  %1099 = vadd.xlane.f32.xlu0 %v1098_v5  ;;  %v1419_v5 = vld [vmem:[#allocation5 + $0x85] ss:$0 sm:$0xff] }
 0x9be   :  { %v1100_v23 = vpop.xlane.xlu0 %1099 }
 0x9bf   :  { %v1101_v26 = vmul.f32 0.03125, %v1100_v23 }
 0x9c1   :  { %v1289_v33 = vrot.slane %v1101_v26, %v1288_v30  ;;  %v1209_v34 = vrot.slane %v1101_v26, %v1208_v31  ;;  %v1229_v38 = vrot.slane %v1101_v26, %v1228_v35  ;;  %v1309_v43 = vrot.slane %v1101_v26, %v1308_v42 }
 0x9c2   :  { %v1249_v47 = vrot.slane %v1101_v26, %v1248_v46  ;;  %v1329_v52 = vrot.slane %v1101_v26, %v1328_v49  ;;  %v1181_v59 = vrot.slane %v1101_v26, %v1180_v55  ;;  %v1269_v8 = vrot.slane %v1101_v26, %v1268_v62 }
 0x9c3   :  { %v1316_v31 = vrot.slane %v1937_v2, %v1308_v42 }
 0xa04   :  { %v1171_v25 = vpop.f32.mrb[14].mxu1 }
 0xa05   :  { %v1175_v27 = vmul.f32 0.03125, %v1171_v25  ;;  %v1559_v28 = vpop.f32.mrb[15].mxu1  ;;  %v1420_v25 = vld [vmem:[#allocation5 + $0x86] ss:$0 sm:$0xff] }
 0xa07   :  { %v1176_v29 = vmul.f32 2.0, %v1175_v27  ;;  %v1237_v27 = vadd.f32 %v1236_v7, %v1937_v2 }
 0xa09   :  { %v1177_v32 = vadd.f32 %v1176_v29, %v1101_v26 }
 0xa0b   :  { %v1290_v36 = vadd.f32 %v1289_v33, %v1177_v32  ;;  %v1210_v37 = vadd.f32 %v1209_v34, %v1177_v32  ;;  %v1230_v41 = vadd.f32 %v1229_v38, %v1177_v32  ;;  %v1310_v45 = vadd.f32 %v1309_v43, %v1177_v32 }
 0xa0c   :  { %v1250_v48 = vadd.f32 %v1249_v47, %v1177_v32  ;;  %v1330_v54 = vadd.f32 %v1329_v52, %v1177_v32  ;;  %v1182_v61 = vadd.f32 %v1181_v59, %v1177_v32  ;;  %v1270_v11 = vadd.f32 %v1269_v8, %v1177_v32 }
 0xa0d   :  { %v1291_v39 = vadd.f32 1e-05, %v1290_v36  ;;  %v1211_v40 = vadd.f32 1e-05, %v1210_v37  ;;  %v1231_v44 = vadd.f32 1e-05, %v1230_v41  ;;  %v1317_v34 = vadd.f32 %v1316_v31, %v1937_v2 }
 0xa0e   :  { %v1311_v9 = vadd.f32 1e-05, %v1310_v45  ;;  %v1251_v53 = vadd.f32 1e-05, %v1250_v48  ;;  %v1331_v60 = vadd.f32 1e-05, %v1330_v54  ;;  %v1256_v38 = vrot.slane %v1937_v2, %v1248_v46 }
 0xa0f   :  { %1657 = vrsqrt.f32 %v1291_v39  ;;  %v1183_v10 = vadd.f32 1e-05, %v1182_v61  ;;  %v1271_v13 = vadd.f32 1e-05, %v1270_v11 }
 0xa10   :  { %1659 = vrsqrt.f32 %v1211_v40  ;;  %v1257_v41 = vadd.f32 %v1256_v38, %v1937_v2 }
 0xa11   :  { %1661 = vrsqrt.f32 %v1231_v44  ;;  %v1336_v44 = vrot.slane %v1937_v2, %v1328_v49 }
 0xa12   :  { %1663 = vrsqrt.f32 %v1311_v9 }
 0xa13   :  { %1665 = vrsqrt.f32 %v1251_v53  ;;  %v1337_v46 = vadd.f32 %v1336_v44, %v1937_v2 }
 0xa14   :  { %1667 = vrsqrt.f32 %v1331_v60 }
 0xa15   :  { %1669 = vrsqrt.f32 %v1183_v10 }
 0xa16   :  { %1671 = vrsqrt.f32 %v1271_v13 }
 0xa19   :  { %v1658_v50 = vpop.eup %1657 }
 0xa1a   :  { %v1660_v51 = vpop.eup %1659  ;;  %1300 = vperm.xlu0 %1631, %v1658_v50   ;;  %v1188_v50 = vrot.slane %v1937_v2, %v1180_v55 }
 0xa1b   :  { %1220 = vperm.xlu1 %1630, %v1660_v51   ;;  %v1662_v57 = vpop.eup %1661 }
 0xa1c   :  { %v1664_v63 = vpop.eup %1663  ;;  %v1189_v53 = vadd.f32 %v1188_v50, %v1937_v2 }
 0xa1d   :  { %v1666_v0 = vpop.eup %1665 }
 0xa1e   :  { %1638 = vset.pattern.permute.xlu0 %v1768_v56  ;;  %v1668_v14 = vpop.eup %1667 }
 0xa1f   :  { %1632 = vset.pattern.permute.xlu1 %v1769_v58  ;;  %v1670_v15 = vpop.eup %1669 }
 0xa20   :  { %1240 = vperm.xlu1 %1632, %v1662_v57   ;;  %v1672_v17 = vpop.eup %1671 }
 0xa24   :  { %1633 = vset.pattern.permute.xlu1 %v1770_v6 }
 0xa25   :  { %1320 = vperm.xlu1 %1633, %v1664_v63  }
 0xa29   :  { %1634 = vset.pattern.permute.xlu1 %v1771_v12 }
 0xa2a   :  { %1260 = vperm.xlu1 %1634, %v1666_v0  }
 0xa2e   :  { %1635 = vset.pattern.permute.xlu1 %v1768_v56  ;;  %v1276_v56 = vrot.slane %v1937_v2, %v1268_v62 }
 0xa2f   :  { %1340 = vperm.xlu1 %1635, %v1668_v14  }
 0xa30   :  { %v1277_v59 = vadd.f32 %v1276_v56, %v1937_v2 }
 0xa33   :  { %1636 = vset.pattern.permute.xlu1 %v1772_v16 }
 0xa34   :  { %1192 = vperm.xlu1 %1636, %v1670_v15  }
 0xa38   :  { %1637 = vset.pattern.permute.xlu1 %v1773_v18 }
 0xa39   :  { %1280 = vperm.xlu1 %1637, %v1672_v17  }
 0xa99   :  { %v1301_v21 = vpop.permute.xlu0 %1300 }
 0xa9a   :  { %v1221_v4 = vpop.permute.xlu1 %1220  ;;  %v1303_v22 = vmul.f32 %v1301_v21, %v1297_v1 }
 0xa9b   :  { %v1223_v23 = vmul.f32 %v1221_v4, %v1217_v3 }
 0xa9c   :  { %v1304_v28 = vmul.f32 %v1419_v5, %v1303_v22 }
 0xa9d   :  { %v1224_v26 = vmul.f32 %v1419_v5, %v1223_v23 }
 0xa9e   :  { %v1305_v35 = vadd.f32 %v1420_v25, %v1304_v28 }
 0xa9f   :  { %v1241_v29 = vpop.permute.xlu1 %1240  ;;  %v1225_v30 = vadd.f32 %v1420_v25, %v1224_v26 }
 0xaa0   :  { %v1243_v32 = vmul.f32 %v1241_v29, %v1237_v27 }
 0xaa1   :  { %1347 = vrot.lane.b32.xlu1 %v1225_v30, %s1763_s16 }
 0xaa2   :  { %v1244_v33 = vmul.f32 %v1419_v5, %v1243_v32 }
 0xaa4   :  { %v1321_v36 = vpop.permute.xlu1 %1320  ;;  %v1245_v37 = vadd.f32 %v1420_v25, %v1244_v33 }
 0xaa5   :  { %v1323_v39 = vmul.f32 %v1321_v36, %v1317_v34  ;;  %1359 = vrot.lane.b32.xlu1 %v1305_v35, %s1763_s16 }
 0xaa6   :  { %1351 = vrot.lane.b32.xlu0 %v1245_v37, %s1760_s13 }
 0xaa7   :  { %v1324_v40 = vmul.f32 %v1419_v5, %v1323_v39 }
 0xaa9   :  { %v1261_v42 = vpop.permute.xlu1 %1260  ;;  %v1325_v43 = vadd.f32 %v1420_v25, %v1324_v40 }
 0xaaa   :  { %v1263_v45 = vmul.f32 %v1261_v42, %v1257_v41 }
 0xaab   :  { %1363 = vrot.lane.b32.xlu1 %v1325_v43, %s1760_s13 }
 0xaac   :  { %v1264_v47 = vmul.f32 %v1419_v5, %v1263_v45 }
 0xaae   :  { %v1341_v9 = vpop.permute.xlu1 %1340  ;;  %v1265_v48 = vadd.f32 %v1420_v25, %v1264_v47 }
 0xaaf   :  { %v1343_v51 = vmul.f32 %v1341_v9, %v1337_v46 }
 0xab0   :  { %1355 = vrot.lane.b32.xlu0 %v1265_v48, %s1753_s6 }
 0xab1   :  { %v1344_v52 = vmul.f32 %v1419_v5, %v1343_v51 }
 0xab3   :  { %v1193_v54 = vpop.permute.xlu1 %1192  ;;  %v1345_v49 = vadd.f32 %v1420_v25, %v1344_v52 }
 0xab4   :  { %v1195_v57 = vmul.f32 %v1193_v54, %v1189_v53 }
 0xab5   :  { %1367 = vrot.lane.b32.xlu1 %v1345_v49, %s1753_s6 }
 0xab6   :  { %v1200_v58 = vmul.f32 %v1419_v5, %v1195_v57 }
 0xab8   :  { %v1205_v60 = vadd.f32 %v1420_v25, %v1200_v58  ;;  %v1281_v55 = vpop.permute.xlu1 %1280 }
 0xab9   :  { %v1283_v61 = vmul.f32 %v1281_v55, %v1277_v59 }
 0xabb   :  { %v1284_v63 = vmul.f32 %v1419_v5, %v1283_v61 }
 0xabd   :  { %v1285_v6 = vadd.f32 %v1420_v25, %v1284_v63 }
 0xb13   :  { %v1348_v8 = vpop.permute.xlu1 %1347 }
 0xb14   :  { %v1370_v0 = vsel %vm67_vm1, %v1205_v60, %v1348_v8 }
 0xb17   :  { %v1360_v11 = vpop.permute.xlu1 %1359 }
 0xb18   :  { %v1352_v10 = vpop.permute.xlu0 %1351  ;;  %v1374_v2 = vsel %vm67_vm1, %v1285_v6, %v1360_v11 }
 0xb19   :  { %v1371_v24 = vsel %vm1018_vm5, %v1370_v0, %v1352_v10 }
 0xb1d   :  { %v1364_v12 = vpop.permute.xlu1 %1363 }
 0xb1e   :  { %v1375_v14 = vsel %vm1018_vm5, %v1374_v2, %v1364_v12 }
 0xb22   :  { %v1356_v62 = vpop.permute.xlu0 %1355 }
 0xb23   :  { %v1373_v13 = vsel %vm1372_vm6, %v1371_v24, %v1356_v62 }
 0xb24   :  { %1377 = vst [vmem:[#allocation7] sm:$0xff] %v1373_v13 }
 0xb27   :  { %v1368_v15 = vpop.permute.xlu1 %1367 }
 0xb28   :  { %v1376_v16 = vsel %vm1372_vm6, %v1375_v14, %v1368_v15 }
 0xb29   :  { %1378 = vst [vmem:[#allocation7 + $0x8] sm:$0xff] %v1376_v16 }
 0xb2a   :  { %1728 = shalt.err (!%p1725_p6)
}
 0xb2b   :  { %s1729_s24 = scalar_lea.hbm %s2028_s2, 256 }
 0xb2c   :  { %p1730_p7 = scmp.ne.s32.totalorder %s2028_s2, %s1729_s24  ;;  %p1733_p8 = scmp.lt.u32.totalorder %s1729_s24, %s2028_s2 }
 0xb2e   :  { %p1735_p9 = pnand %p1733_p8, %p1730_p7 }
 0xb30   :  { %1738 = shalt.err (!%p1735_p9)
}
 0xb31   :  { %1388 = dma.vmem_to_hbm [thread:$0]  %s1386_s20, 256, %s2028_s2, [#allocation4]  }
 0xb32   :  { %1743 = dma.done.wait [#allocation4], 256  }
 0xb33   :  { %1744 = vsyncadd [#allocation4], 4294967040 }
 0xb34   :  { %1392 = vsyncpa [#allocation3], 1 }
 0xb35   :  { %1393 = vsyncpa [#allocation6], 1 }
 0xb36   :  { %1394 = vsyncpa [#allocation4], 1 }

</bundles_post_ra>
